<compile_context>
chip_gen: v6e
topology: v6e:2x2x1
jax: 0.10.0
libtpu: 0.0.40
codegen_flags: <defaults>
</compile_context>

<pallas_src>
import math

import jax
import jax.numpy as jnp
from jax.experimental import pallas as pl
from jax.experimental.pallas import tpu as pltpu

_MIB = 1024 * 1024


def compute_hidden_dim(dim: int, multiple_of: int, ff_dim_multiplier=None) -> int:
    hidden_dim = 4 * dim
    hidden_dim = int(2 * hidden_dim / 3)
    if ff_dim_multiplier is not None:
        hidden_dim = int(ff_dim_multiplier * hidden_dim)
    hidden_dim = multiple_of * ((hidden_dim + multiple_of - 1) // multiple_of)
    return hidden_dim


def _round_up(x: int, m: int) -> int:
    return ((x + m - 1) // m) * m


def _tpu_vmem_capacity() -> int:
    try:
        return int(pltpu.get_tpu_info().vmem_capacity_bytes)
    except Exception:
        return 128 * _MIB


def _chip_tile_defaults():
    """Per-generation (tm, tn, vmem_capacity) defaults."""
    vmem = _tpu_vmem_capacity()
    kind = ""
    try:
        kind = jax.devices()[0].device_kind.lower()
    except Exception:
        pass
    if vmem <= 96 * _MIB:            # v7x-class: 64 MiB VMEM / TC
        return 512, 256, vmem
    if "v5" in kind:                 # v5e: cap tm so the single vst slot doesn't bind
        return 512, 512, vmem
    return 1024, 512, vmem           # v6e-class 128 MiB parts


# ----------------------------------------------------------------------------
# Kernel
# ----------------------------------------------------------------------------
def _ffn_kernel(x_ref, w13_ref, w2_ref, o_ref, acc_ref):
    # x_ref:   (tm, D)         token tile, input dtype (cast in-kernel)
    # w13_ref: (1, D, 2*tn)    [w1.T | w3.T] columns for this hidden tile
    # w2_ref:  (tn, D)         w2.T rows for this hidden tile
    # o_ref:   (tm, D)         output tile (written on the last hidden step)
    # acc_ref: (tm, D) f32     VMEM accumulator (persists across hidden steps)
    k = pl.program_id(1)

    @pl.when(k == 0)
    def _init():
        acc_ref[...] = jnp.zeros_like(acc_ref)

    tn = w2_ref.shape[0]
    cdtype = w13_ref.dtype
    x = x_ref[...].astype(cdtype)           # single cast, inside the kernel

    # One fused MXU matmul yields both projections for this hidden tile:
    # columns [0:tn] come from w1.T, columns [tn:2*tn] from w3.T.
    h13 = jnp.dot(x, w13_ref[0], preferred_element_type=jnp.float32)  # (tm, 2tn)
    h1 = h13[:, :tn]
    h3 = h13[:, tn:]

    # Numerically stable SiLU in f32:
    #   sigmoid(h1) = 1/(1+z) if h1>=0 else z/(1+z), with z = exp(-|h1|) in (0,1].
    # exp + the approximate reciprocal both run on the EUP slot.
    z = jnp.exp(-jnp.abs(h1))
    inv = pl.reciprocal(1.0 + z, approx=True)
    sig = jnp.where(h1 >= 0, inv, z * inv)
    h = (h1 * sig * h3).astype(w2_ref.dtype)  # single cast, right before w2

    acc_ref[...] += jnp.dot(h, w2_ref[...], preferred_element_type=jnp.float32)

    @pl.when(k == pl.num_programs(1) - 1)
    def _store():
        o_ref[...] = acc_ref[...].astype(o_ref.dtype)


# ----------------------------------------------------------------------------
# Weight preparation (do once at weight-load time, not per forward call)
# ----------------------------------------------------------------------------
def prepare_ffn_weights(w1, w2, w3, *, tn=None, dtype=jnp.bfloat16):
    """Pack PyTorch-layout weights for the kernel.

    w1, w3: (H, D);  w2: (D, H)  -- nn.Linear layout.
    Returns:
      w13t: (nk, D, 2*tn)  per-hidden-tile concat of w1.T and w3.T columns
      w2t:  (H_pad, D)     padded w2.T
    `dtype` is the streaming/compute dtype (bf16 by default on every TPU
    generation -- all MXUs are bf16-native); accumulation is always f32.
    If `tn` is None: keep the whole weight set VMEM-resident (nk == 1) when it
    fits in ~1/3 of VMEM, otherwise use the per-generation hidden tile.
    """
    H, D = w1.shape
    assert D % 128 == 0, "model dim must be a multiple of 128 (lane aligned)"
    if dtype is None:
        dtype = jnp.bfloat16
    isz = jnp.dtype(dtype).itemsize

    _, def_tn, vmem_cap = _chip_tile_defaults()
    H128 = _round_up(H, 128)

    if tn is None:
        if 3 * D * H128 * isz <= vmem_cap // 3:
            tn = H128                 # resident path: weights fetched once, ever
        else:
            tn = def_tn
    assert tn % 128 == 0, "hidden tile must be a multiple of 128"
    tn = min(tn, H128)

    H_pad = _round_up(H, tn)
    nk = H_pad // tn

    # Zero padding of the hidden dim is a mathematical no-op for SwiGLU:
    # silu(0) * 0 == 0 and the padded w2 rows are zero.
    w1t = jnp.zeros((D, H_pad), dtype).at[:, :H].set(w1.T.astype(dtype))
    w3t = jnp.zeros((D, H_pad), dtype).at[:, :H].set(w3.T.astype(dtype))
    w2t = jnp.zeros((H_pad, D), dtype).at[:H, :].set(w2.T.astype(dtype))

    w1t = w1t.reshape(D, nk, tn).transpose(1, 0, 2)   # (nk, D, tn)
    w3t = w3t.reshape(D, nk, tn).transpose(1, 0, 2)   # (nk, D, tn)
    w13t = jnp.concatenate([w1t, w3t], axis=-1)       # (nk, D, 2*tn)
    return w13t, w2t


# ----------------------------------------------------------------------------
# Forward pass
# ----------------------------------------------------------------------------
def ffn_prepared(x, w13t, w2t, *, tm=None, interpret: bool = False):
    """x: (batch, seq, dim); weights from prepare_ffn_weights."""
    B, S, D = x.shape
    nk, d_chk, two_tn = w13t.shape
    tn = two_tn // 2
    H_pad = w2t.shape[0]
    assert d_chk == D and nk * tn == H_pad

    out_dtype = x.dtype
    cdtype = w13t.dtype
    x_isz = jnp.dtype(x.dtype).itemsize
    w_isz = jnp.dtype(cdtype).itemsize
    o_isz = jnp.dtype(out_dtype).itemsize

    M = B * S
    def_tm, _, vmem_cap = _chip_tile_defaults()
    if tm is None:
        tm = def_tm
    tm = _round_up(max(8, min(tm, _round_up(M, 8))), 8)

    def plan_bytes(tm_):
        return (2 * tm_ * D * x_isz            # x stream (double-buffered)
                + 2 * D * 2 * tn * w_isz       # w13 stream
                + 2 * tn * D * w_isz           # w2 stream
                + 2 * tm_ * D * o_isz          # output blocks
                + tm_ * D * 4                  # f32 accumulator scratch
                + 3 * tm_ * 2 * tn * 4)        # h13 / SiLU intermediates (f32)

    # Auto-shrink the token tile to fit ~55% of the *actual* VMEM capacity.
    budget = int(0.55 * vmem_cap)
    while tm > 8 and plan_bytes(tm) > budget:
        tm = max(8, (tm // 2) // 8 * 8)

    n_m = pl.cdiv(M, tm)
    # Never request more VMEM than the chip has (v7x: 64 MiB / TC).
    vmem_limit = int(min(int(0.9 * vmem_cap),
                         max(32 * _MIB, 2 * plan_bytes(tm))))

    x2d = x.reshape(M, D)      # metadata-only: no copy, no cast, no pad

    # Serpentine hidden-axis traversal: i even -> k, i odd -> nk-1-k.  The
    # boundary weight tile keeps the same block index across the i transition,
    # so Pallas skips its re-fetch (saves 1/nk of the weight DMA).
    def _serp(i, k):
        return k + (i % 2) * (nk - 1 - 2 * k)

    def w13_map(i, k):
        return (_serp(i, k), 0, 0)

    def w2_map(i, k):
        return (_serp(i, k), 0)

    weight_bytes = (w13t.size + w2t.size) * w_isz
    weight_passes = 1 if nk == 1 else int(n_m)     # resident vs. re-streamed
    flops = 6 * M * D * H_pad                      # 2*M*D*2H + 2*M*H*D
    bytes_accessed = int(M * D * (x_isz + o_isz) + weight_passes * weight_bytes)

    out2d = pl.pallas_call(
        _ffn_kernel,
        out_shape=jax.ShapeDtypeStruct((M, D), out_dtype),
        grid_spec=pltpu.PrefetchScalarGridSpec(
            num_scalar_prefetch=0,
            grid=(n_m, nk),                        # hidden (reduction) axis last
            in_specs=[
                pl.BlockSpec((tm, D), lambda i, k: (i, 0)),
                pl.BlockSpec((1, D, 2 * tn), w13_map),
                pl.BlockSpec((tn, D), w2_map),
            ],
            out_specs=pl.BlockSpec((tm, D), lambda i, k: (i, 0)),
            scratch_shapes=[pltpu.VMEM((tm, D), jnp.float32)],
        ),
        compiler_params=pltpu.CompilerParams(
            dimension_semantics=("parallel", "arbitrary"),
            vmem_limit_bytes=vmem_limit),
        cost_estimate=pl.CostEstimate(
            flops=flops,
            transcendentals=2 * M * H_pad,         # exp + reciprocal
            bytes_accessed=bytes_accessed),
        interpret=interpret,
    )(x2d, w13t, w2t)

    return out2d.reshape(B, S, D)


def feed_forward_block(x, w1, w2, w3, *, tm=None, tn=None,
                       compute_dtype=jnp.bfloat16):
    """Convenience wrapper: PyTorch-layout weights in, (B, S, D) out.
    For repeated calls, use prepare_ffn_weights() once + ffn_prepared()."""
    w13t, w2t = prepare_ffn_weights(w1, w2, w3, tn=tn, dtype=compute_dtype)
    return ffn_prepared(x, w13t, w2t, tm=tm)


# ----------------------------------------------------------------------------
# Reference + test
# ----------------------------------------------------------------------------
def _reference(x, w1, w2, w3):
    h1 = jnp.einsum("bsd,hd->bsh", x, w1)
    h3 = jnp.einsum("bsd,hd->bsh", x, w3)
    return jnp.einsum("bsh,dh->bsd", h1 * jax.nn.sigmoid(h1) * h3, w2)


if __name__ == "__main__":
    # Small, TPU-friendly shapes consistent with the module.
    dim = 128
    multiple_of = 128
    hidden = compute_hidden_dim(dim, multiple_of)   # 4*128=512 -> 341 -> 384
    batch, seq = 2, 8

    key = jax.random.PRNGKey(0)
    kx, k1, k2, k3 = jax.random.split(key, 4)

    def init_linear(k, out_f, in_f):
        bound = 1.0 / math.sqrt(in_f)
        return jax.random.uniform(k, (out_f, in_f), jnp.float32, -bound, bound)

    x = jax.random.normal(kx, (batch, seq, dim), jnp.float32)
    w1 = init_linear(k1, hidden, dim)   # dim -> hidden
    w2 = init_linear(k2, dim, hidden)   # hidden -> dim
    w3 = init_linear(k3, hidden, dim)   # dim -> hidden

    ref = _reference(x, w1, w2, w3)

    # (1) f32 streaming path with small tiles (tm=8 -> n_m=2, tn=128 -> nk=3):
    #     exercises the hidden-dim reduction, the serpentine weight traversal
    #     and the accumulator init/writeback.
    w13t_f32, w2t_f32 = prepare_ffn_weights(w1, w2, w3, tn=128,
                                            dtype=jnp.float32)
    out_f32 = jax.block_until_ready(ffn_prepared(x, w13t_f32, w2t_f32, tm=8))
    assert out_f32.shape == (batch, seq, dim)
    assert jnp.allclose(out_f32, ref, atol=2e-3, rtol=2e-3), "f32 mismatch"

    # (2) default path: bf16 streaming weights + f32 accumulation; this tiny
    #     layer takes the VMEM-resident route (nk == 1, weights fetched once).
    w13t_bf, w2t_bf = prepare_ffn_weights(w1, w2, w3)
    out_bf = jax.block_until_ready(ffn_prepared(x, w13t_bf, w2t_bf))
    assert out_bf.shape == (batch, seq, dim)
    assert jnp.allclose(out_bf, ref, atol=3e-2, rtol=3e-2), "bf16 mismatch"

    print("KERNEL_OK")
</pallas_src>

<mosaic_0001>
module attributes {stable_mosaic.version = 11 : i64} {
  func.func @_ffn_kernel(%arg0: i32, %arg1: i32, %arg2: memref<8x128xf32, #tpu.memory_space<vmem>>, %arg3: memref<1x128x256xf32, #tpu.memory_space<vmem>>, %arg4: memref<128x128xf32, #tpu.memory_space<vmem>>, %arg5: memref<8x128xf32, #tpu.memory_space<vmem>>, %arg6: memref<8x128xf32, #tpu.memory_space<vmem>>) attributes {dimension_semantics = [#tpu.dimension_semantics<parallel>, #tpu.dimension_semantics<arbitrary>], iteration_bounds = array<i64: 2, 3>, scalar_prefetch = 0 : i64, scratch_operands = 1 : i64, tpu.core_type = #tpu.core_type<tc>, window_params = [{transform_indices = @transform_0, window_bounds = array<i64: 8, 128>}, {transform_indices = @transform_1, window_bounds = array<i64: 1, 128, 256>}, {transform_indices = @transform_2, window_bounds = array<i64: 128, 128>}, {transform_indices = @transform_3, window_bounds = array<i64: 8, 128>}]} {
    %c0_i32 = arith.constant 0 : i32
    %0 = arith.cmpi eq, %arg1, %c0_i32 : i32
    %1 = arith.extui %0 : i1 to i32
    %c0_i32_0 = arith.constant 0 : i32
    %2 = arith.cmpi ne, %1, %c0_i32_0 : i32
    scf.if %2 {
      %cst_16 = arith.constant 0.000000e+00 : f32
      %30 = vector.broadcast %cst_16 : f32 to vector<8x128xf32>
      %c0_17 = arith.constant 0 : index
      %c0_18 = arith.constant 0 : index
      %31 = vector.load %arg6[%c0_17, %c0_18] : memref<8x128xf32, #tpu.memory_space<vmem>>, vector<8x128xf32>
      tpu.vector_store %arg6[%c0_17, %c0_18], %30 {strides = array<i32>} : memref<8x128xf32, #tpu.memory_space<vmem>>, vector<8x128xf32>,
    } else {
    }
    %c0 = arith.constant 0 : index
    %c0_1 = arith.constant 0 : index
    %3 = vector.load %arg2[%c0, %c0_1] : memref<8x128xf32, #tpu.memory_space<vmem>>, vector<8x128xf32>
    %c0_2 = arith.constant 0 : index
    %c0_3 = arith.constant 0 : index
    %c0_4 = arith.constant 0 : index
    %4 = vector.load %arg3[%c0_2, %c0_3, %c0_4] : memref<1x128x256xf32, #tpu.memory_space<vmem>>, vector<1x128x256xf32>
    %5 = vector.shape_cast %4 : vector<1x128x256xf32> to vector<128x256xf32>
    %cst = arith.constant dense<0.000000e+00> : vector<8x256xf32>
    %6 = tpu.matmul %3, %5, %cst {dimension_numbers = #tpu.dot_dimension_numbers<[1], [0], [0], [1], [0, 0, 1, 1], [], []>} : vector<8x128xf32>, vector<128x256xf32>, vector<8x256xf32> -> vector<8x256xf32>
    %7 = vector.extract_strided_slice %6 {offsets = [0, 0], sizes = [8, 128], strides = [1, 1]} : vector<8x256xf32> to vector<8x128xf32>
    %8 = vector.extract_strided_slice %6 {offsets = [0, 128], sizes = [8, 128], strides = [1, 1]} : vector<8x256xf32> to vector<8x128xf32>
    %9 = math.absf %7 : vector<8x128xf32>
    %cst_5 = arith.constant 0.000000e+00 : f32
    %10 = vector.broadcast %cst_5 : f32 to vector<8x128xf32>
    %11 = arith.subf %10, %9 : vector<8x128xf32>
    %12 = math.exp %11 : vector<8x128xf32>
    %cst_6 = arith.constant 1.000000e+00 : f32
    %13 = vector.broadcast %cst_6 : f32 to vector<8x128xf32>
    %14 = arith.addf %13, %12 : vector<8x128xf32>
    %15 = tpu.reciprocal %14 {approx = true} : vector<8x128xf32> -> vector<8x128xf32>
    %cst_7 = arith.constant 0.000000e+00 : f32
    %16 = vector.broadcast %cst_7 : f32 to vector<8x128xf32>
    %17 = arith.cmpf oge, %7, %16 : vector<8x128xf32>
    %18 = arith.mulf %12, %15 : vector<8x128xf32>
    %19 = arith.select %17, %15, %18 : vector<8x128xi1>, vector<8x128xf32>
    %20 = arith.mulf %7, %19 : vector<8x128xf32>
    %21 = arith.mulf %20, %8 : vector<8x128xf32>
    %c0_8 = arith.constant 0 : index
    %c0_9 = arith.constant 0 : index
    %22 = vector.load %arg6[%c0_8, %c0_9] : memref<8x128xf32, #tpu.memory_space<vmem>>, vector<8x128xf32>
    %c0_10 = arith.constant 0 : index
    %c0_11 = arith.constant 0 : index
    %23 = vector.load %arg4[%c0_10, %c0_11] : memref<128x128xf32, #tpu.memory_space<vmem>>, vector<128x128xf32>
    %cst_12 = arith.constant dense<0.000000e+00> : vector<8x128xf32>
    %24 = tpu.matmul %21, %23, %cst_12 {dimension_numbers = #tpu.dot_dimension_numbers<[1], [0], [0], [1], [0, 0, 1, 1], [], []>} : vector<8x128xf32>, vector<128x128xf32>, vector<8x128xf32> -> vector<8x128xf32>
    %25 = arith.addf %22, %24 : vector<8x128xf32>
    %c0_13 = arith.constant 0 : index
    %c0_14 = arith.constant 0 : index
    %26 = vector.load %arg6[%c0_13, %c0_14] : memref<8x128xf32, #tpu.memory_space<vmem>>, vector<8x128xf32>
    tpu.vector_store %arg6[%c0_13, %c0_14], %25 {strides = array<i32>} : memref<8x128xf32, #tpu.memory_space<vmem>>, vector<8x128xf32>,
    %c2_i32 = arith.constant 2 : i32
    %27 = arith.cmpi eq, %arg1, %c2_i32 : i32
    %28 = arith.extui %27 : i1 to i32
    %c0_i32_15 = arith.constant 0 : i32
    %29 = arith.cmpi ne, %28, %c0_i32_15 : i32
    scf.if %29 {
      %c0_16 = arith.constant 0 : index
      %c0_17 = arith.constant 0 : index
      %30 = vector.load %arg6[%c0_16, %c0_17] : memref<8x128xf32, #tpu.memory_space<vmem>>, vector<8x128xf32>
      %c0_18 = arith.constant 0 : index
      %c0_19 = arith.constant 0 : index
      %31 = vector.load %arg5[%c0_18, %c0_19] : memref<8x128xf32, #tpu.memory_space<vmem>>, vector<8x128xf32>
      tpu.vector_store %arg5[%c0_18, %c0_19], %30 {strides = array<i32>} : memref<8x128xf32, #tpu.memory_space<vmem>>, vector<8x128xf32>,
    } else {
    }
    return
  }
  func.func @transform_0(%arg0: i32, %arg1: i32) -> (i32, i32) {
    %c0_i32 = arith.constant 0 : i32
    %c0_i32_0 = arith.constant 0 : i32
    return %arg0, %c0_i32 : i32, i32
  }
  func.func @transform_1(%arg0: i32, %arg1: i32) -> (i32, i32, i32) {
    %c2_i32 = arith.constant 2 : i32
    %c0_i32 = arith.constant 0 : i32
    %0 = arith.cmpi eq, %c2_i32, %c0_i32 : i32
    %c1_i32 = arith.constant 1 : i32
    %1 = arith.select %0, %c1_i32, %c2_i32 : i32
    %2 = arith.remsi %arg0, %1 : i32
    %c0_i32_0 = arith.constant 0 : i32
    %3 = arith.cmpi ne, %2, %c0_i32_0 : i32
    %c0_i32_1 = arith.constant 0 : i32
    %4 = arith.cmpi slt, %2, %c0_i32_1 : i32
    %c0_i32_2 = arith.constant 0 : i32
    %5 = arith.cmpi slt, %1, %c0_i32_2 : i32
    %6 = arith.xori %4, %5 : i1
    %7 = arith.andi %6, %3 : i1
    %8 = arith.addi %2, %1 : i32
    %9 = arith.select %7, %8, %2 : i32
    %c2_i32_3 = arith.constant 2 : i32
    %10 = arith.muli %c2_i32_3, %arg1 : i32
    %c2_i32_4 = arith.constant 2 : i32
    %11 = arith.subi %c2_i32_4, %10 : i32
    %12 = arith.muli %9, %11 : i32
    %13 = arith.addi %arg1, %12 : i32
    %c0_i32_5 = arith.constant 0 : i32
    %c0_i32_6 = arith.constant 0 : i32
    %c0_i32_7 = arith.constant 0 : i32
    return %13, %c0_i32_5, %c0_i32_6 : i32, i32, i32
  }
  func.func @transform_2(%arg0: i32, %arg1: i32) -> (i32, i32) {
    %c2_i32 = arith.constant 2 : i32
    %c0_i32 = arith.constant 0 : i32
    %0 = arith.cmpi eq, %c2_i32, %c0_i32 : i32
    %c1_i32 = arith.constant 1 : i32
    %1 = arith.select %0, %c1_i32, %c2_i32 : i32
    %2 = arith.remsi %arg0, %1 : i32
    %c0_i32_0 = arith.constant 0 : i32
    %3 = arith.cmpi ne, %2, %c0_i32_0 : i32
    %c0_i32_1 = arith.constant 0 : i32
    %4 = arith.cmpi slt, %2, %c0_i32_1 : i32
    %c0_i32_2 = arith.constant 0 : i32
    %5 = arith.cmpi slt, %1, %c0_i32_2 : i32
    %6 = arith.xori %4, %5 : i1
    %7 = arith.andi %6, %3 : i1
    %8 = arith.addi %2, %1 : i32
    %9 = arith.select %7, %8, %2 : i32
    %c2_i32_3 = arith.constant 2 : i32
    %10 = arith.muli %c2_i32_3, %arg1 : i32
    %c2_i32_4 = arith.constant 2 : i32
    %11 = arith.subi %c2_i32_4, %10 : i32
    %12 = arith.muli %9, %11 : i32
    %13 = arith.addi %arg1, %12 : i32
    %c0_i32_5 = arith.constant 0 : i32
    %c0_i32_6 = arith.constant 0 : i32
    return %13, %c0_i32_5 : i32, i32
  }
  func.func @transform_3(%arg0: i32, %arg1: i32) -> (i32, i32) {
    %c0_i32 = arith.constant 0 : i32
    %c0_i32_0 = arith.constant 0 : i32
    return %arg0, %c0_i32 : i32, i32
  }
}

</mosaic_0001>

<bundles_post_ra>
// kernel: tpu_custom_call.1
= control target key start
LH: loop header
LB: loop body
LE: loop exit
PB: predicated region body
PF: predicated region fallthrough
CT: control target
= control target key end

     0   :  { %s1606_s0 = inlined_call_operand.hbm [shape: f32[16,128], index: 0, kind: input, shape index: {}]   ;;  %s1607_s1 = inlined_call_operand.hbm [shape: f32[3,128,256], index: 1, kind: input, shape index: {}]   ;;  %s1608_s2 = inlined_call_operand.hbm [shape: f32[384,128], index: 2, kind: input, shape index: {}]   ;;  %s1609_s3 = inlined_call_operand.hbm [shape: f32[16,128], index: 3, kind: output, shape index: {}]  }
   0x1   :  { %1621 = sst [smem:[#allocation22_spill]] %s1607_s1 }
   0x2   :  { %1622 = sst [smem:[#allocation23_spill]] %s1609_s3 }
   0x3   :  { %8 = vsyncpa [#allocation4], 0 }
   0x4   :  { %10 = vsyncpa [#allocation4 + $0x1], 0 }
   0x5   :  { %11 = vsyncpa [#allocation7], 0 }
   0x6   :  { %13 = vsyncpa [#allocation7 + $0x1], 0 }
   0x7   :  { %14 = vsyncpa [#allocation5], 0 }
   0x8   :  { %16 = vsyncpa [#allocation5 + $0x1], 0  ;;  %s1224_s12 = smov 0   ;;  %s1226_s13 = smov 0  }
   0x9   :  { %s1228_s14 = smov 0   ;;  %s1230_s15 = smov 0  }
   0xa   :  { %s1232_s16 = smov 0   ;;  %s1234_s17 = smov 0  }
   0xb   :  { %s1236_s18 = smov 0   ;;  %s1238_s19 = smov 0  }
   0xc   :  { %s1240_s20 = smov 0   ;;  %s1242_s21 = smov 0  }
   0xd   :  { %s1244_s22 = smov 0  }
   0xe LB: > { %1623 = sst [smem:[#allocation13_spill]] %s1171_s17  ;;  %s31_s23 = sadd.s32 1, %s1183_s20  ;;  %s1191_s22 = sphi %s1244_s22, %s22_s22   ;;  %s1187_s21 = sphi %s1242_s21, %s1660_s21   ;;  %s1183_s20 = sphi %s1240_s20, %s1659_s20   ;;  %s1179_s19 = sphi %s1238_s19, %s1658_s19   ;;  %s1175_s18 = sphi %s1236_s18, %s1657_s18   ;;  %s1171_s17 = sphi %s1234_s17, %s1656_s17   ;;  %s1167_s16 = sphi %s1232_s16, %s1665_s16   ;;  %s1163_s15 = sphi %s1230_s15, %s1664_s15   ;;  %s1159_s14 = sphi %s1228_s14, %s1663_s14   ;;  %s1155_s13 = sphi %s1226_s13, %s1662_s13   ;;  %s1151_s12 = sphi %s1224_s12, %s1661_s12  }
   0xf   : > { %1624 = sst [smem:[#allocation14_spill]] %s1175_s18  ;;  %s34_s24 = sadd.s32 1, %s1187_s21 }
  0x10   : > { %1625 = sst [smem:[#allocation15_spill]] %s1179_s19  ;;  %p32_p0 = scmp.ge.s32.totalorder %s31_s23, 3 }
  0x11   : > { %1626 = sst [smem:[#allocation16_spill]] %s1183_s20  ;;  %p49_p1 = scmp.eq.s32.totalorder %s1191_s22, 0 }
  0x12   : > { %1627 = sst [smem:[#allocation17_spill]] %s1187_s21  ;;  %s65_s25 = ssub.s32 0, %s1187_s21 }
  0x13   : > { %s1667_s23 = smov (%p32_p0, %s31_s23), 0  ;;  %s1669_s24 = smov (!%p32_p0, %s34_s24), %s1187_s21 }
  0x14   : > { %1628 = sst [smem:[#allocation18_spill]] %s1667_s23  ;;  %s761_s26 = smin.u32 %s1187_s21, %s65_s25 }
  0x15   : > { %s764_s27 = sshll.u32 %s1183_s20, 1  ;;  %p36_p2 = scmp.ge.s32.totalorder %s1669_s24, 2 }
  0x16   : > { %s67_s28 = sand.u32 1, %s761_s26   ;;  %s77_s29 = ssub.s32 2, %s764_s27 }
  0x17   : > { %s1671_s24 = smov (%p36_p2, %s1669_s24), 0  ;;  %p763_p3 = scmp.lt.s32.totalorder %s67_s28, 0 }
  0x18   : > { %1629 = sst [smem:[#allocation19_spill]] %s1671_s24  ;;  %s81_s30 = ssub.s32 0, %s1671_s24 }
  0x19   : > { %s74_s4 = sadd.s32 2, %s67_s28  ;;  %s765_s5 = smin.u32 %s81_s30, %s1671_s24 }
  0x1a   : > { %s768_s6 = sshll.u32 %s1667_s23, 1  ;;  %s1673_s4 = smov (!%p763_p3, %s74_s4), %s67_s28 }
  0x1b   : > { %s83_s7 = sand.u32 1, %s765_s5   ;;  %s93_s8 = ssub.s32 2, %s768_s6 }
  0x1c   : > { %s78_s9 = smul.u32 %s77_s29, %s1673_s4  ;;  %s99_s11 = sadd.s32 1, %s1159_s14 }
  0x1d   : > { %p767_p4 = scmp.lt.s32.totalorder %s83_s7, 0  ;;  %s90_s25 = sadd.s32 2, %s83_s7 }
  0x1e   : > { %s1294_s10 = sadd.s32 %s1183_s20, %s78_s9  ;;  %p106_p5 = scmp.ne.s32.totalorder %s1159_s14, %s1155_s13 }
  0x1f   : > { %s1675_s25 = smov (!%p767_p4, %s90_s25), %s83_s7  ;;  %p1612_p8 = scmp.lt.s32.totalorder %s1191_s22, 6 }
  0x20   : > { %p1303_p7 = por %p106_p5, %p49_p1  ;;  %s94_s27 = smul.u32 %s93_s8, %s1675_s25 }
  0x21   : > { %s238_s28 = sand.u32 1, %s1191_s22   ;;  %s240_s29 = sand.u32 1, %s1159_s14  }
  0x22   : > { %s95_s30 = sadd.s32 %s94_s27, %s1667_s23  ;;  %s781_s5 = sshll.u32 %s240_s29, 8 }
  0x23   : > { %s96_s4 = ssub.s32 %s1294_s10, %s95_s30  ;;  %s806_s6 = sshll.u32 %s1294_s10, 12 }
  0x24   : > { %p97_p9 = scmp.eq.s32.totalorder %s96_s4, 0  ;;  %s242_s9 = scalar_lea.vmem [#allocation6], %s781_s5 }
  0x25   : > { %s265_s20 = sshll.u32 %s242_s9, 4  ;;  %s1632_s1 = sld [smem:[#allocation22_spill]]  ;;  %s1321_s20 = int_to_ptr.vmem [resolvable:$true] %s265_s20 }
  0x26   : > { %s1314_s3 = scalar_select %p97_p9, %s1159_s14, %s99_s11  }
  0x27   : > { %p1327_p10 = pnand %p1612_p8, %p1303_p7  ;;  %s1331_s11 = sshll.u32 %s240_s29, 7 }
  0x28   : > { %1631 = sst [smem:[#allocation20_spill]] %s1314_s3  ;;  %s1333_s25 = scalar_lea.sflag [#allocation7], %s238_s28 }
  0x29   : > { %p1617_p12 = pneg %p1327_p10 }
  0x2b   : > { %s1319_s18 = scalar_lea.hbm %s1632_s1, %s806_s6  ;;  %s988_s30 = scalar_lea.hbm %s1632_s1, 12288 }
  0x2c   : > { %s983_s19 = scalar_lea.hbm %s1319_s18, 4096  ;;  %p989_p2 = scmp.lt.s32.totalorder %s1319_s18, %s1632_s1 }
  0x2d   : > { %p984_p11 = scmp.ne.s32.totalorder %s1319_s18, %s983_s19  ;;  %p990_p3 = scmp.lt.s32.totalorder %s988_s30, %s983_s19 }
  0x2f   : > { %p986_p13 = pnand %p1617_p12, %p984_p11  ;;  %p991_p4 = por %p990_p3, %p989_p2 }
  0x31   : > { %p987_p0 = pneg %p986_p13 }
  0x33   : > { %p992_p5 = pnand %p991_p4, %p987_p0 }
  0x35   : > { %995 = shalt.err (!%p992_p5)
}
  0x36   : > { %s996_s28 = scalar_lea.vmem %s1321_s20, 4096  ;;  %s1193_s29 = smov [#allocation6]  }
  0x37   : > { %p997_p7 = scmp.ne.s32.totalorder %s1321_s20, %s996_s28  ;;  %s1001_s6 = sshll.u32 %s1193_s29, 4  ;;  %s1002_s6 = int_to_ptr.vmem [resolvable:$false] %s1001_s6 }
  0x38   : > { %s1003_s9 = scalar_lea.vmem %s1002_s6, 8192  ;;  %p1004_p13 = scmp.lt.s32.totalorder %s1321_s20, %s1002_s6 }
  0x39   : > { %p999_p9 = pnand %p997_p7, %p1617_p12  ;;  %p1005_p8 = scmp.lt.s32.totalorder %s1003_s9, %s996_s28 }
  0x3b   : > { %p1000_p11 = pneg %p999_p9  ;;  %p1006_p6 = por %p1005_p8, %p1004_p13 }
  0x3d   : > { %p1007_p2 = pnand %p1006_p6, %p1000_p11 }
  0x3f   : > { %1010 = shalt.err (!%p1007_p2)
}
  0x40   : > { %s1194_s7 = smov 256   ;;  %s1195_s19 = smov 16  }
  0x41   : > { %874 = dma.hbm_to_vmem [thread:$0]  (!%p1327_p10), %s1319_s18, 4096, %s1321_s20, %s1333_s25, %s1194_s7, %s1194_s7, %s1195_s19  }
  0x42   : > { %s279_s26 = scalar_lea.vmem [#allocation8], %s1331_s11  ;;  %p795_p6 = scmp.ge.s32.totalorder %s1191_s22, 1 }
  0x43   : > { %s302_s27 = sshll.u32 %s279_s26, 4  ;;  %p310_p8 = scmp.lt.s32.totalorder %s1191_s22, 7  ;;  %s1422_s27 = int_to_ptr.vmem [resolvable:$true] %s302_s27 }
  0x44   : > { %s1368_s4 = sadd.s32 4294967295, %s1191_s22   ;;  %s760_s5 = sadd.s32 4294967294, %s1191_s22  }
  0x45   : > { %p1363_p0 = pnand %p795_p6, %p310_p8  ;;  %s38_s28 = ssub.s32 %s1187_s21, %s1671_s24 }
  0x46   : > { %s41_s29 = sadd.s32 1, %s1171_s17  ;;  %p39_p3 = scmp.eq.s32.totalorder %s38_s28, 0 }
  0x47   : > { %p48_p4 = scmp.ne.s32.totalorder %s1171_s17, %s1167_s16  ;;  %p54_p5 = scmp.ne.s32.totalorder %s1167_s16, %s1163_s15 }
  0x48   : > { %p55_p7 = scmp.eq.s32.totalorder %s1368_s4, 0  ;;  %p1638_p13 = scmp.ne.s32.totalorder %s1155_s13, %s1151_s12 }
  0x49   : > { %s1380_s18 = scalar_select %p39_p3, %s1171_s17, %s41_s29  }
  0x4a   : > { %p1384_p9 = por %p49_p1, %p48_p4  ;;  %p1388_p11 = por %p55_p7, %p54_p5 }
  0x4b   : > { %1635 = sst [smem:[#allocation21_spill]] %s1380_s18  ;;  %p1395_p2 = por %p1638_p13, %p55_p7 }
  0x4c   : > { %s1637_s11 = scalar_select %p1388_p11, 1, 0 }
  0x4d   : > { %s1639_s6 = scalar_select %p1395_p2, 1, 0 }
  0x4e   : > { %p194_p6 = scmp.eq.s32.totalorder %s1368_s4, 5  ;;  %p200_p8 = scmp.eq.s32.totalorder %s760_s5, 5 }
  0x4f   : > { %s220_s9 = sand.u32 1, %s1171_s17   ;;  %s780_s28 = sshll.u32 %s1187_s21, 7 }
  0x50   : > { %p1401_p3 = por %p194_p6, %p48_p4  ;;  %p1405_p1 = por %p200_p8, %p54_p5 }
  0x51   : > { %s779_s26 = sshll.u32 %s220_s9, 3  ;;  %s229_s12 = scalar_lea.hbm %s1606_s0, %s780_s28 }
  0x52   : > { %s1640_s7 = scalar_select %p1401_p3, 1, 0 }
  0x53   : > { %s1641_s19 = scalar_select %p1405_p1, 1, 0 }
  0x54   : > { %s224_s24 = scalar_lea.vmem [#allocation3], %s779_s26  ;;  %p1642_p7 = scmp.lt.s32.totalorder %s1191_s22, 6 }
  0x55   : > { %s231_s23 = sshll.u32 %s224_s24, 4  ;;  %s807_s18 = sshll.u32 %s1294_s10, 11  ;;  %s232_s23 = int_to_ptr.vmem [resolvable:$true] %s231_s23 }
  0x56   : > { %p1417_p13 = pnand %p1642_p7, %p1384_p9  ;;  %s1427_s21 = scalar_lea.hbm %s1608_s2, %s807_s18 }
  0x57   : > { %s221_s1 = scalar_lea.sflag [#allocation4], %s220_s9  ;;  %s1024_s24 = scalar_lea.vmem %s232_s23, 128 }
  0x58   : > { %p1013_p4 = pneg %p1417_p13  ;;  %p1025_p5 = scmp.ne.s32.totalorder %s232_s23, %s1024_s24 }
  0x59   : > { %s1196_s20 = smov [#allocation3]  }
  0x5a   : > { %p1027_p6 = pnand %p1025_p5, %p1013_p4  ;;  %s1029_s26 = sshll.u32 %s1196_s20, 4  ;;  %s1030_s26 = int_to_ptr.vmem [resolvable:$false] %s1029_s26 }
  0x5b   : > { %s1031_s28 = scalar_lea.vmem %s1030_s26, 256  ;;  %p1032_p9 = scmp.lt.s32.totalorder %s232_s23, %s1030_s26 }
  0x5c   : > { %p1028_p8 = pneg %p1027_p6  ;;  %p1033_p7 = scmp.lt.s32.totalorder %s1031_s28, %s1024_s24 }
  0x5e   : > { %p1034_p12 = por %p1033_p7, %p1032_p9 }
  0x60   : > { %p1035_p1 = pnand %p1034_p12, %p1028_p8 }
  0x62   : > { %1038 = shalt.err (!%p1035_p1)
}
  0x63   : > { %871 = dma.hbm_to_vmem [thread:$0]  (!%p1417_p13), %s229_s12, 128, %s232_s23, %s221_s1  }
  0x64   : > { %s1039_s3 = scalar_lea.hbm %s1427_s21, 2048  ;;  %p1644_p4 = pneg %p1327_p10 }
  0x65   : > { %p1040_p3 = scmp.ne.s32.totalorder %s1427_s21, %s1039_s3  ;;  %s1044_s18 = scalar_lea.hbm %s1608_s2, 6144 }
  0x66   : > { %p1045_p12 = scmp.lt.s32.totalorder %s1427_s21, %s1608_s2  ;;  %p1046_p1 = scmp.lt.s32.totalorder %s1044_s18, %s1039_s3 }
  0x67   : > { %p1042_p5 = pnand %p1040_p3, %p1644_p4 }
  0x68   : > { %p1047_p8 = por %p1046_p1, %p1045_p12 }
  0x69   : > { %p1043_p6 = pneg %p1042_p5 }
  0x6b   : > { %p1048_p9 = pnand %p1047_p8, %p1043_p6 }
  0x6d   : > { %1051 = shalt.err (!%p1048_p9)
}
  0x6e   : > { %s1052_s23 = scalar_lea.vmem %s1422_s27, 2048  ;;  %p1645_p3 = pmov %p1644_p4 }
  0x6f   : > { %p1053_p13 = scmp.ne.s32.totalorder %s1422_s27, %s1052_s23  ;;  %s1197_s12 = smov [#allocation8]  }
  0x70   : > { %s1057_s5 = sshll.u32 %s1197_s12, 4  ;;  %s1058_s5 = int_to_ptr.vmem [resolvable:$false] %s1057_s5 }
  0x71   : > { %p1055_p7 = pnand %p1053_p13, %p1645_p3  ;;  %s1059_s1 = scalar_lea.vmem %s1058_s5, 4096 }
  0x72   : > { %p1060_p5 = scmp.lt.s32.totalorder %s1422_s27, %s1058_s5  ;;  %p1061_p2 = scmp.lt.s32.totalorder %s1059_s1, %s1052_s23 }
  0x73   : > { %p1056_p4 = pneg %p1055_p7 }
  0x74   : > { %p1062_p11 = por %p1061_p2, %p1060_p5 }
  0x76   : > { %p1063_p12 = pnand %p1062_p11, %p1056_p4 }
  0x78   : > { %1066 = shalt.err (!%p1063_p12)
}
  0x79   : > { %s1198_s24 = smov 128   ;;  %s1199_s20 = smov 8  }
  0x7a   : > { %877 = dma.hbm_to_vmem [thread:$0]  (!%p1327_p10), %s1427_s21, 2048, %s1422_s27, %s1333_s25, %s1198_s24, %s1198_s24, %s1199_s20  }
  0x7b   : > { %314 = sbr.rel (%p1363_p0) target bundleno = 649 (0x289), region = 32  ;;  %s1459_s26 = sand.u32 (!%p1363_p0), 1, %s1167_s16  }
  0x7c   : > { %s796_s28 = sshll.u32 (!%p1363_p0), %s1459_s26, 3  ;;  %s317_s3 = scalar_lea.sflag (!%p1363_p0), [#allocation4], %s1459_s26 }
  0x7d   : > { %s1463_s17 = scalar_lea.vmem (!%p1363_p0), [#allocation3], %s796_s28  ;;  %p1646_p11 = scmp.ne.s32.totalorder (!%p1363_p0), %s1637_s11, 0 }
  0x80   : > { %1138 = dma.done.wait (%p1646_p11), %s317_s3, 128  }
  0x81   : > { %1140 = vsyncadd (%p1646_p11), %s317_s3, 4294967168  ;;  %s325_s21 = sand.u32 1, %s1368_s4   ;;  %s327_s8 = sand.u32 1, %s1155_s13  }
  0x82   : > { %s797_s25 = sshll.u32 %s327_s8, 8  ;;  %s326_s27 = scalar_lea.sflag [#allocation7], %s325_s21 }
  0x83   : > { %s1471_s30 = scalar_lea.vmem [#allocation6], %s797_s25  ;;  %p1647_p10 = scmp.ne.s32.totalorder %s1639_s6, 0 }
  0x85   : > { %1142 = dma.done.wait (%p1647_p10), %s326_s27, 6144  }
  0x86   : > { %1144 = vsyncadd (%p1647_p10), %s326_s27, 4294961152  ;;  %s798_s10 = sshll.u32 %s327_s8, 7  ;;  %s1479_s9 = scalar_lea.vmem [#allocation9], %s796_s28 }
  0x87   : > { %s1477_s18 = scalar_lea.vmem [#allocation8], %s798_s10  ;;  %s1648_s11 = sld [smem:[#allocation14_spill]] }
  0x8d   : > { %p800_p0 = scmp.ne.s32.totalorder %s1648_s11, 0 }
  0x8f   : > { %407 = sbr.rel (%p800_p0) target bundleno = 150 (0x96), region = 48 }
  0x94   : > { %v1200_v0 = vmov 0.0  }
  0x95   : > { %408 = vst [vmem:[#allocation2] sm:$0xff] %v1200_v0 }
  0x96 PF: > { %v441_v1 = vld [vmem:[%s1471_s30 + $0xf8] sm:$0xff]  ;;  %v440_v2 = vld [vmem:[%s1471_s30 + $0xf0] sm:$0xff]  ;;  %v439_v3 = vld [vmem:[%s1471_s30 + $0xe8] sm:$0xff]  ;;  %v1201_v5 = vmov 0.0   ;;  %vm1202_vm0 = vmmov 0   ;;  %s1649_s4 = sld [smem:[#allocation14_spill]] }
  0x97   : > { %442 = vmatprep.subr.mxu0 %v441_v1  ;;  %v438_v4 = vld [vmem:[%s1471_s30 + $0xe0] sm:$0xff]  ;;  %506 = vmatprep.mubr.f32.mxu0 %v1201_v5  ;;  %v437_v6 = vld [vmem:[%s1471_s30 + $0xd8] sm:$0xff]  ;;  %v436_v7 = vld [vmem:[%s1471_s30 + $0xd0] sm:$0xff] }
  0x98   : > { %443 = vmatpush1.msra.mxu0 %v440_v2  ;;  %825 = vmatprep.subr.mxu1 %v1201_v5  ;;  %v435_v8 = vld [vmem:[%s1471_s30 + $0xc8] sm:$0xff]  ;;  %v434_v9 = vld [vmem:[%s1471_s30 + $0xc0] sm:$0xff]  ;;  %v433_v10 = vld [vmem:[%s1471_s30 + $0xb8] sm:$0xff] }
  0x99   : > { %444 = vmatprep.subr.mxu0 %v439_v3  ;;  %v432_v11 = vld [vmem:[%s1471_s30 + $0xb0] sm:$0xff]  ;;  %v431_v12 = vld [vmem:[%s1471_s30 + $0xa8] sm:$0xff]  ;;  %v430_v13 = vld [vmem:[%s1471_s30 + $0xa0] sm:$0xff]  ;;  %857 = vmatprep.mubr.msk.f32.mxu1 %vm1202_vm0, %v1201_v5 }
  0x9a   : > { %445 = vmatpush1.msra.mxu0 %v438_v4  ;;  %v429_v14 = vld [vmem:[%s1471_s30 + $0x98] sm:$0xff]  ;;  %v428_v15 = vld [vmem:[%s1471_s30 + $0x90] sm:$0xff]  ;;  %v427_v16 = vld [vmem:[%s1471_s30 + $0x88] sm:$0xff] }
  0x9b   : > { %446 = vmatprep.subr.mxu0 %v437_v6  ;;  %v426_v17 = vld [vmem:[%s1471_s30 + $0x80] sm:$0xff]  ;;  %v425_v18 = vld [vmem:[%s1471_s30 + $0x78] sm:$0xff]  ;;  %v424_v19 = vld [vmem:[%s1471_s30 + $0x70] sm:$0xff] }
  0x9c   : > { %447 = vmatpush1.msra.mxu0 %v436_v7  ;;  %v423_v20 = vld [vmem:[%s1471_s30 + $0x68] sm:$0xff]  ;;  %v422_v21 = vld [vmem:[%s1471_s30 + $0x60] sm:$0xff]  ;;  %v421_v22 = vld [vmem:[%s1471_s30 + $0x58] sm:$0xff]  ;;  %p801_p2 = scmp.ne.s32.totalorder %s1649_s4, 2 }
  0x9d   : > { %448 = vmatprep.subr.mxu0 %v435_v8  ;;  %v420_v23 = vld [vmem:[%s1471_s30 + $0x50] sm:$0xff]  ;;  %v419_v24 = vld [vmem:[%s1471_s30 + $0x48] sm:$0xff]  ;;  %v418_v25 = vld [vmem:[%s1471_s30 + $0x40] sm:$0xff] }
  0x9e   : > { %449 = vmatpush1.msra.mxu0 %v434_v9  ;;  %v417_v26 = vld [vmem:[%s1471_s30 + $0x38] sm:$0xff]  ;;  %v416_v27 = vld [vmem:[%s1471_s30 + $0x30] sm:$0xff]  ;;  %v415_v28 = vld [vmem:[%s1471_s30 + $0x28] sm:$0xff] }
  0x9f   : > { %450 = vmatprep.subr.mxu0 %v433_v10  ;;  %v414_v29 = vld [vmem:[%s1471_s30 + $0x20] sm:$0xff]  ;;  %v413_v30 = vld [vmem:[%s1471_s30 + $0x18] sm:$0xff]  ;;  %v412_v31 = vld [vmem:[%s1471_s30 + $0x10] sm:$0xff] }
  0xa0   : > { %451 = vmatpush1.msra.mxu0 %v432_v11  ;;  %v411_v32 = vld [vmem:[%s1471_s30 + $0x8] sm:$0xff]  ;;  %v410_v33 = vld [vmem:[%s1471_s30] sm:$0xff]  ;;  %v409_v34 = vld [vmem:[%s1463_s17] sm:$0xff] }
  0xa1   : > { %452 = vmatprep.subr.mxu0 %v431_v12  ;;  %v540_v35 = vld [vmem:[%s1477_s18 + $0x78] sm:$0xff]  ;;  %v539_v36 = vld [vmem:[%s1477_s18 + $0x70] sm:$0xff]  ;;  %v538_v37 = vld [vmem:[%s1477_s18 + $0x68] sm:$0xff] }
  0xa2   : > { %453 = vmatpush1.msra.mxu0 %v430_v13  ;;  %826 = vmatpush3.msra.mxu1 %v540_v35  ;;  %v537_v38 = vld [vmem:[%s1477_s18 + $0x60] sm:$0xff]  ;;  %v536_v39 = vld [vmem:[%s1477_s18 + $0x58] sm:$0xff]  ;;  %v535_v40 = vld [vmem:[%s1477_s18 + $0x50] sm:$0xff] }
  0xa3   : > { %454 = vmatprep.subr.mxu0 %v429_v14  ;;  %827 = vmatprep.subr.mxu1 %v1201_v5  ;;  %v534_v41 = vld [vmem:[%s1477_s18 + $0x48] sm:$0xff]  ;;  %v533_v42 = vld [vmem:[%s1477_s18 + $0x40] sm:$0xff]  ;;  %v532_v43 = vld [vmem:[%s1477_s18 + $0x38] sm:$0xff] }
  0xa4   : > { %455 = vmatpush1.msra.mxu0 %v428_v15  ;;  %828 = vmatpush3.msra.mxu1 %v539_v36  ;;  %v531_v44 = vld [vmem:[%s1477_s18 + $0x30] sm:$0xff]  ;;  %v530_v45 = vld [vmem:[%s1477_s18 + $0x28] sm:$0xff]  ;;  %v529_v46 = vld [vmem:[%s1477_s18 + $0x20] sm:$0xff] }
  0xa5   : > { %456 = vmatprep.subr.mxu0 %v427_v16  ;;  %829 = vmatprep.subr.mxu1 %v1201_v5  ;;  %v528_v47 = vld [vmem:[%s1477_s18 + $0x18] sm:$0xff]  ;;  %v527_v48 = vld [vmem:[%s1477_s18 + $0x10] sm:$0xff]  ;;  %v526_v49 = vld [vmem:[%s1477_s18 + $0x8] sm:$0xff] }
  0xa6   : > { %457 = vmatpush1.msra.mxu0 %v426_v17  ;;  %830 = vmatpush3.msra.mxu1 %v538_v37  ;;  %v525_v50 = vld [vmem:[%s1477_s18] sm:$0xff]  ;;  %v524_v63 = vld [vmem:[#allocation2] sm:$0xff] }
  0xa7   : > { %458 = vmatprep.subr.mxu0 %v425_v18  ;;  %831 = vmatprep.subr.mxu1 %v1201_v5 }
  0xa8   : > { %459 = vmatpush1.msra.mxu0 %v424_v19  ;;  %832 = vmatpush3.msra.mxu1 %v537_v38 }
  0xa9   : > { %460 = vmatprep.subr.mxu0 %v423_v20  ;;  %833 = vmatprep.subr.mxu1 %v1201_v5 }
  0xaa   : > { %461 = vmatpush1.msra.mxu0 %v422_v21  ;;  %834 = vmatpush3.msra.mxu1 %v536_v39 }
  0xab   : > { %462 = vmatprep.subr.mxu0 %v421_v22  ;;  %835 = vmatprep.subr.mxu1 %v1201_v5 }
  0xac   : > { %463 = vmatpush1.msra.mxu0 %v420_v23  ;;  %836 = vmatpush3.msra.mxu1 %v535_v40 }
  0xad   : > { %464 = vmatprep.subr.mxu0 %v419_v24  ;;  %837 = vmatprep.subr.mxu1 %v1201_v5 }
  0xae   : > { %465 = vmatpush1.msra.mxu0 %v418_v25  ;;  %838 = vmatpush3.msra.mxu1 %v534_v41 }
  0xaf   : > { %466 = vmatprep.subr.mxu0 %v417_v26  ;;  %839 = vmatprep.subr.mxu1 %v1201_v5 }
  0xb0   : > { %467 = vmatpush1.msra.mxu0 %v416_v27  ;;  %840 = vmatpush3.msra.mxu1 %v533_v42 }
  0xb1   : > { %468 = vmatprep.subr.mxu0 %v415_v28  ;;  %841 = vmatprep.subr.mxu1 %v1201_v5 }
  0xb2   : > { %469 = vmatpush1.msra.mxu0 %v414_v29  ;;  %842 = vmatpush3.msra.mxu1 %v532_v43 }
  0xb3   : > { %470 = vmatprep.subr.mxu0 %v413_v30  ;;  %843 = vmatprep.subr.mxu1 %v1201_v5 }
  0xb4   : > { %471 = vmatpush1.msra.mxu0 %v412_v31  ;;  %844 = vmatpush3.msra.mxu1 %v531_v44 }
  0xb5   : > { %472 = vmatprep.subr.mxu0 %v411_v32  ;;  %845 = vmatprep.subr.mxu1 %v1201_v5 }
  0xb6   : > { %473 = vmatpush1.msra.mxu0 %v410_v33  ;;  %846 = vmatpush3.msra.mxu1 %v530_v45 }
  0xb7   : > { %507 = vmatmul.mubr.f32.vlgmr.msra.gmra.mxu0 %v409_v34  ;;  %847 = vmatprep.subr.mxu1 %v1201_v5 }
  0xb8   : > { %848 = vmatpush3.msra.mxu1 %v529_v46 }
  0xb9   : > { %849 = vmatprep.subr.mxu1 %v1201_v5 }
  0xba   : > { %850 = vmatpush3.msra.mxu1 %v528_v47 }
  0xbb   : > { %851 = vmatprep.subr.mxu1 %v1201_v5 }
  0xbc   : > { %852 = vmatpush3.msra.mxu1 %v527_v48 }
  0xbd   : > { %853 = vmatprep.subr.mxu1 %v1201_v5 }
  0xbe   : > { %854 = vmatpush3.msra.mxu1 %v526_v49 }
  0xbf   : > { %855 = vmatprep.subr.mxu1 %v1201_v5 }
  0xc0   : > { %856 = vmatpush3.msra.mxu1 %v525_v50 }
 0x177   : > { %v508_v51 = vpop.f32.mrf.mxu0 }
 0x178   : > { %v513_v52 = vand.u32 2147483647, %v508_v51  ;;  %vm519_vm1 = vcmp.ge.f32.partialorder %v508_v51, 0.0 }
 0x179   : > { %v510_v61 = vpop.f32.mrf.mxu0 }
 0x17a   : > { %v514_v53 = vsub.f32 0.0, %v513_v52 }
 0x17c   : > { %v515_v54 = vmul.f32 1.442695, %v514_v53 }
 0x17e   : > { %979 = vpow2.f32 %v515_v54 }
 0x18b   : > { %v980_v55 = vpop.eup %979 }
 0x18c   : > { %v517_v56 = vadd.f32 1.0, %v980_v55 }
 0x18e   : > { %981 = vrcp.f32 %v517_v56 }
 0x19b   : > { %v982_v57 = vpop.eup %981 }
 0x19c   : > { %v520_v58 = vmul.f32 %v982_v57, %v980_v55 }
 0x19e   : > { %v521_v59 = vsel %vm519_vm1, %v982_v57, %v520_v58 }
 0x19f   : > { %v522_v60 = vmul.f32 %v521_v59, %v508_v51 }
 0x1a1   : > { %v523_v62 = vmul.f32 %v522_v60, %v510_v61 }
 0x1a3   : > { %858 = vmatmul.mubr.f32.vlgmr.msra.gmra.mxu1 %v523_v62 }
 0x262   : > { %616 = sbr.rel (%p801_p2) target bundleno = 623 (0x26f), region = 52 }
 0x263   : > { %v607_v0 = vpop.f32.mrf.mxu1 }
 0x264   : > { %v611_v1 = vadd.f32 %v607_v0, %v524_v63 }
 0x265   : > { %v859_v2 = vpop.f32.mrf.mxu1 }
 0x266   : > { %612 = vst [vmem:[#allocation2] sm:$0xff] %v611_v1 }
 0x26d   : > { %v617_v3 = vld [vmem:[#allocation2] sm:$0xff] }
 0x26e   : > { %618 = vst [vmem:[%s1479_s9] sm:$0xff] %v617_v3 }
 0x26f PF: > { %s1650_s6 = sld [smem:[#allocation15_spill]]  ;;  %s633_s24 = sshll.u32 %s1479_s9, 4  ;;  %s634_s24 = int_to_ptr.vmem [resolvable:$true] %s633_s24 }
 0x270   : > { %s1651_s5 = sld [smem:[#allocation23_spill]]  ;;  %s620_s20 = scalar_lea.sflag [#allocation5], %s1459_s26 }
 0x271   : > { %s1067_s28 = scalar_lea.vmem %s634_s24, 128  ;;  %p1652_p1 = scmp.ne.s32.totalorder %s1640_s7, 0 }
 0x272   : > { %p1068_p6 = scmp.ne.s32.totalorder %s634_s24, %s1067_s28  ;;  %s1203_s3 = smov [#allocation9]  }
 0x273   : > { %s1071_s17 = sshll.u32 %s1203_s3, 4  ;;  %s1072_s17 = int_to_ptr.vmem [resolvable:$false] %s1071_s17 }
 0x274   : > { %p1069_p8 = pnand %p1068_p6, %p1652_p1  ;;  %s1073_s21 = scalar_lea.vmem %s1072_s17, 256 }
 0x275   : > { %s803_s29 = sshll.u32 %s1650_s6, 7  ;;  %p1074_p13 = scmp.lt.s32.totalorder %s634_s24, %s1072_s17 }
 0x276   : > { %s631_s1 = scalar_lea.hbm %s1651_s5, %s803_s29  ;;  %p1070_p9 = pneg %p1069_p8 }
 0x277   : > { %p1075_p3 = scmp.lt.s32.totalorder %s1073_s21, %s1067_s28 }
 0x279   : > { %p1076_p7 = por %p1075_p3, %p1074_p13 }
 0x27b   : > { %p1077_p4 = pnand %p1076_p7, %p1070_p9 }
 0x27d   : > { %1080 = shalt.err (!%p1077_p4)
}
 0x27e   : > { %s1081_s8 = scalar_lea.hbm %s631_s1, 128  ;;  %s1085_s27 = scalar_lea.hbm %s1651_s5, 256 }
 0x27f   : > { %p1082_p5 = scmp.ne.s32.totalorder %s631_s1, %s1081_s8  ;;  %p1086_p10 = scmp.lt.s32.totalorder %s631_s1, %s1651_s5 }
 0x280   : > { %p1087_p0 = scmp.lt.s32.totalorder %s1085_s27, %s1081_s8 }
 0x281   : > { %p1083_p12 = pnand %p1082_p5, %p1652_p1 }
 0x282   : > { %p1088_p2 = por %p1087_p0, %p1086_p10 }
 0x283   : > { %p1084_p11 = pneg %p1083_p12 }
 0x285   : > { %p1089_p6 = pnand %p1088_p2, %p1084_p11 }
 0x287   : > { %1092 = shalt.err (!%p1089_p6)
}
 0x288   : > { %866 = dma.vmem_to_hbm [thread:$0]  (%p1652_p1), %s634_s24, 128, %s631_s1, %s620_s20  }
 0x289 PF: > { %p883_p8 = scmp.ge.s32.totalorder %s1191_s22, 2  ;;  %s645_s18 = sand.u32 1, %s1163_s15  }
 0x28a   : > { %p1653_p9 = scmp.ne.s32.totalorder %s1641_s19, 0  ;;  %s646_s9 = scalar_lea.sflag [#allocation5], %s645_s18 }
 0x28c   : > { %p879_p13 = pnand %p883_p8, %p1653_p9 }
 0x28e   : > { %p880_p3 = pneg %p879_p13 }
 0x290   : > { %1146 = dma.done.wait (%p880_p3), %s646_s9, 128  }
 0x291   : > { %1148 = vsyncadd (%p880_p3), %s646_s9, 4294967168  ;;  %s22_s22 = sadd.s32 1, %s1191_s22   ;;  %s1654_s11 = sld [smem:[#allocation20_spill]] }
 0x292   : > { %p19_p7 = scmp.ge.s32.totalorder %s22_s22, 8   ;;  %s1655_s7 = sld [smem:[#allocation13_spill]] }
 0x293   : > { %s1656_s17 = sld [smem:[#allocation21_spill]]  ;;  %s1661_s12 = smov %s1155_s13 }
 0x294   : > { %s1657_s18 = sld [smem:[#allocation16_spill]]  ;;  %s1662_s13 = smov %s1159_s14 }
 0x295   : > { %s1658_s19 = sld [smem:[#allocation17_spill]]  ;;  %s1664_s15 = smov %s1167_s16 }
 0x296   : > { %s1659_s20 = sld [smem:[#allocation18_spill]]  ;;  %21 = sbr.rel (!%p19_p7) target bundleno = 14 (0xe), region = 109 }
 0x297   : > { %s1660_s21 = sld [smem:[#allocation19_spill]]  ;;  %s1663_s14 = smov %s1654_s11 }
 0x298   : > { %s1665_s16 = smov %s1655_s7 }
 0x29b   :  { %651 = vsyncpa [#allocation4], 1 }
 0x29c   :  { %653 = vsyncpa [#allocation4 + $0x1], 1 }
 0x29d   :  { %654 = vsyncpa [#allocation7], 1 }
 0x29e   :  { %656 = vsyncpa [#allocation7 + $0x1], 1 }
 0x29f   :  { %657 = vsyncpa [#allocation5], 1 }
 0x2a0   :  { %659 = vsyncpa [#allocation5 + $0x1], 1 }

</bundles_post_ra>
